<compile_context>
chip_gen: v7x
topology: tpu7x:2x2x1
jax: 0.10.0
libtpu: 0.0.40
codegen_flags: <defaults>
</compile_context>

<pallas_src>
import functools

import jax
import jax.numpy as jnp
from jax.experimental import pallas as pl
from jax.experimental.pallas import tpu as pltpu


def _round_up(x, m):
    return ((x + m - 1) // m) * m


def _cdiv(a, b):
    return (a + b - 1) // b


def _pick_tile_i(I, want):
    """Largest 128-multiple divisor of I that is <= want; else full I."""
    if I <= want:
        return I
    cand = max(128, (want // 128) * 128)
    while cand >= 128:
        if I % cand == 0:
            return cand
        cand -= 128
    return I


def _chip_config():
    """Per-generation tile / VMEM defaults (review: tile_m is the roofline knob)."""
    kind = ""
    try:
        kind = jax.devices()[0].device_kind.lower()
    except Exception:
        pass
    if "v7" in kind:
        gen = "v7x"
    elif "v6" in kind:
        gen = "v6e"
    elif "v5" in kind and ("lite" in kind or "v5e" in kind):
        gen = "v5e"
    else:
        gen = None
    cfgs = {
        "v6e": dict(tile_m=1024, tile_i=512, vmem=100 * 1024 * 1024, deep_w=False),
        "v7x": dict(tile_m=512, tile_i=512, vmem=56 * 1024 * 1024, deep_w=False),
        "v5e": dict(tile_m=512, tile_i=512, vmem=96 * 1024 * 1024, deep_w=True),
        None: dict(tile_m=512, tile_i=512, vmem=56 * 1024 * 1024, deep_w=False),
    }
    return gen, cfgs[gen]


def _weight_spec(shape, index_map, deep):
    """BlockSpec for a streamed weight; optionally 3-deep buffered (v5e)."""
    if deep:
        try:
            return pl.BlockSpec(shape, index_map, pipeline_mode=pl.Buffered(3))
        except TypeError:
            pass
    return pl.BlockSpec(shape, index_map)


# -------------------------- kernels --------------------------

def _gated_mlp_tiled_kernel(x_ref, wgu_ref, bgu_ref, wd_ref, bd_ref,
                            o_ref, acc_ref):
    """Grid (M tiles ["parallel"], I tiles ["arbitrary"]); f32 accumulator."""
    j = pl.program_id(1)

    @pl.when(j == 0)
    def _():
        acc_ref[...] = jnp.zeros_like(acc_ref)

    x = x_ref[...]  # (tm, H), native dtype -> full-rate MXU

    g = jnp.dot(x, wgu_ref[0], preferred_element_type=jnp.float32)
    g = g + bgu_ref[0].astype(jnp.float32)
    u = jnp.dot(x, wgu_ref[1], preferred_element_type=jnp.float32)
    u = u + bgu_ref[1].astype(jnp.float32)

    # SiLU epilogue in f32 (sigmoid goes to the EUP slot).
    h = (g * jax.nn.sigmoid(g)) * u

    # Partial down_proj for this I-tile: (tm, ti) @ (ti, H), accumulated in f32.
    acc_ref[...] += jnp.dot(h.astype(wd_ref.dtype), wd_ref[...],
                            preferred_element_type=jnp.float32)

    @pl.when(j == pl.num_programs(1) - 1)
    def _():
        o_ref[...] = (acc_ref[...] + bd_ref[...].astype(jnp.float32)
                      ).astype(o_ref.dtype)


def _gated_mlp_resident_kernel(x_ref, wgu_ref, bgu_ref, wd_ref, bd_ref, o_ref):
    """Weights fully VMEM-resident (constant index maps); no accumulator."""
    x = x_ref[...]
    g = jnp.dot(x, wgu_ref[0], preferred_element_type=jnp.float32)
    g = g + bgu_ref[0].astype(jnp.float32)
    u = jnp.dot(x, wgu_ref[1], preferred_element_type=jnp.float32)
    u = u + bgu_ref[1].astype(jnp.float32)
    h = (g * jax.nn.sigmoid(g)) * u
    out = jnp.dot(h.astype(wd_ref.dtype), wd_ref[...],
                  preferred_element_type=jnp.float32)
    o_ref[...] = (out + bd_ref[...].astype(jnp.float32)).astype(o_ref.dtype)


# -------------------------- host-side wrapper --------------------------

def prepare_params(w_gate, b_gate, w_up, b_up, w_down, b_down, dtype=None):
    """One-time conversion from PyTorch Linear layout (out, in) to the fused
    (in, out) layout the kernel consumes; optionally cast once (e.g. to bf16
    for full-rate MXU) outside the per-call path.

    Returns (wgu, bgu, wd_t, bd_row):
      wgu: (2, H, I)  -- stacked gate/up weights (one DMA stream)
      bgu: (2, 1, I)  -- stacked gate/up biases
      wd_t: (I, H)    -- down_proj weight, transposed
      bd_row: (1, H)  -- down_proj bias
    """
    cast = (lambda a: a.astype(dtype)) if dtype is not None else (lambda a: a)
    wgu = jnp.stack([cast(w_gate).T, cast(w_up).T])            # (2, H, I)
    bgu = jnp.stack([cast(b_gate), cast(b_up)])[:, None, :]    # (2, 1, I)
    wd_t = cast(w_down).T                                      # (I, H)
    bd_row = cast(b_down)[None, :]                             # (1, H)
    return wgu, bgu, wd_t, bd_row


@functools.partial(jax.jit, static_argnames=("tile_m", "tile_i", "force_tiled"))
def gated_mlp(x, wgu, bgu, wd, bd, *, tile_m=None, tile_i=None,
              force_tiled=False):
    """x: (B, T, H); (wgu, bgu, wd, bd) from prepare_params()."""
    B, T, H = x.shape
    I = wd.shape[0]
    M = B * T

    gen, cfg = _chip_config()
    tile_m = cfg["tile_m"] if tile_m is None else tile_m
    tile_i = cfg["tile_i"] if tile_i is None else tile_i
    vmem_limit = cfg["vmem"]

    # Compute dtype: feed the MXU the narrower of (x, weights) (bf16/fp8 path).
    cdt = (wgu.dtype
           if jnp.dtype(wgu.dtype).itemsize < jnp.dtype(x.dtype).itemsize
           else x.dtype)
    sub = {4: 8, 2: 16, 1: 32}.get(jnp.dtype(cdt).itemsize, 8)

    # Row tile: <= tile_m, multiple of the sublane packing for the compute dtype.
    tm = min(tile_m, _round_up(M, sub))
    tm = max(sub, (tm // sub) * sub)
    # v7x: make sure the "parallel" M axis has >= 2 tiles so both TCs are busy.
    if gen == "v7x" and M >= 512 and _round_up(M, tm) // tm < 2:
        tm = max(256, _round_up(_cdiv(M, 2), 256))
    Mp = _round_up(M, tm)

    x2d = x.reshape(M, H).astype(cdt)
    if Mp != M:
        x2d = jnp.pad(x2d, ((0, Mp - M), (0, 0)))

    out_dtype = x.dtype

    # Decide whether the whole weight set can stay VMEM-resident.
    def _nbytes(a):
        return a.size * jnp.dtype(a.dtype).itemsize

    w_bytes = _nbytes(wgu) + _nbytes(bgu) + _nbytes(wd) + _nbytes(bd)
    io_bytes = 2 * tm * H * (jnp.dtype(cdt).itemsize
                             + jnp.dtype(out_dtype).itemsize)   # x + out, 2-buf
    inter_bytes = 3 * tm * I * 4                                # g/u/h f32 temps
    resident = (not force_tiled) and (
        w_bytes + io_bytes + inter_bytes <= int(0.7 * vmem_limit))

    if resident:
        grid = (Mp // tm,)
        out2d = pl.pallas_call(
            _gated_mlp_resident_kernel,
            out_shape=jax.ShapeDtypeStruct((Mp, H), out_dtype),
            grid_spec=pltpu.PrefetchScalarGridSpec(
                num_scalar_prefetch=0,
                grid=grid,
                in_specs=[
                    pl.BlockSpec((tm, H), lambda i: (i, 0)),        # x row tile
                    pl.BlockSpec((2, H, I), lambda i: (0, 0, 0)),   # fused W_g|W_u
                    pl.BlockSpec((2, 1, I), lambda i: (0, 0, 0)),   # fused biases
                    pl.BlockSpec((I, H), lambda i: (0, 0)),         # W_down
                    pl.BlockSpec((1, H), lambda i: (0, 0)),         # b_down
                ],
                out_specs=pl.BlockSpec((tm, H), lambda i: (i, 0)),
            ),
            compiler_params=pltpu.CompilerParams(
                dimension_semantics=("parallel",),
                vmem_limit_bytes=vmem_limit,
            ),
        )(x2d, wgu, bgu, wd, bd)
    else:
        # Pad I to a lane multiple if needed (exact: padded gate/up columns are
        # zero -> h == silu(0) * 0 == 0, and padded W_down rows contribute 0).
        if I % 128 != 0:
            Ip = _round_up(I, 128)
            pad = Ip - I
            wgu = jnp.pad(wgu, ((0, 0), (0, 0), (0, pad)))
            bgu = jnp.pad(bgu, ((0, 0), (0, 0), (0, pad)))
            wd = jnp.pad(wd, ((0, pad), (0, 0)))
            I = Ip

        ti = _pick_tile_i(I, tile_i)
        grid = (Mp // tm, I // ti)
        deep = cfg["deep_w"]

        out2d = pl.pallas_call(
            _gated_mlp_tiled_kernel,
            out_shape=jax.ShapeDtypeStruct((Mp, H), out_dtype),
            grid_spec=pltpu.PrefetchScalarGridSpec(
                num_scalar_prefetch=0,
                grid=grid,
                in_specs=[
                    pl.BlockSpec((tm, H), lambda i, j: (i, 0)),           # x
                    _weight_spec((2, H, ti), lambda i, j: (0, 0, j), deep),  # W_g|W_u
                    pl.BlockSpec((2, 1, ti), lambda i, j: (0, 0, j)),     # b_g|b_u
                    _weight_spec((ti, H), lambda i, j: (j, 0), deep),     # W_down
                    pl.BlockSpec((1, H), lambda i, j: (0, 0)),            # b_down
                ],
                out_specs=pl.BlockSpec((tm, H), lambda i, j: (i, 0)),
                scratch_shapes=[pltpu.VMEM((tm, H), jnp.float32)],        # f32 acc
            ),
            compiler_params=pltpu.CompilerParams(
                dimension_semantics=("parallel", "arbitrary"),
                vmem_limit_bytes=vmem_limit,
            ),
        )(x2d, wgu, bgu, wd, bd)

    if Mp != M:
        out2d = out2d[:M]
    return out2d.reshape(B, T, H)


def reference_gated_mlp(x, w_gate, b_gate, w_up, b_up, w_down, b_down):
    """Pure-JAX reference matching the PyTorch forward exactly (PyTorch layout)."""
    g = jnp.einsum("bth,ih->bti", x, w_gate) + b_gate
    u = jnp.einsum("bth,ih->bti", x, w_up) + b_up
    h = jax.nn.silu(g) * u
    return jnp.einsum("bti,hi->bth", h, w_down) + b_down


if __name__ == "__main__":
    # --- Test 1: small shapes consistent with the module (n_embd=32,
    #             ffn_factor=2), f32, weights-resident fast path. ---
    B, T, H = 2, 8, 32
    I = 2 * H

    key = jax.random.PRNGKey(0)
    kx, kwg, kbg, kwu, kbu, kwd, kbd = jax.random.split(key, 7)

    x = jax.random.normal(kx, (B, T, H), dtype=jnp.float32)
    sh = 1.0 / (H ** 0.5)
    si = 1.0 / (I ** 0.5)
    w_gate = jax.random.uniform(kwg, (I, H), jnp.float32, -sh, sh)
    b_gate = jax.random.uniform(kbg, (I,), jnp.float32, -sh, sh)
    w_up   = jax.random.uniform(kwu, (I, H), jnp.float32, -sh, sh)
    b_up   = jax.random.uniform(kbu, (I,), jnp.float32, -sh, sh)
    w_down = jax.random.uniform(kwd, (H, I), jnp.float32, -si, si)
    b_down = jax.random.uniform(kbd, (H,), jnp.float32, -si, si)

    params = prepare_params(w_gate, b_gate, w_up, b_up, w_down, b_down)
    out = jax.block_until_ready(gated_mlp(x, *params))
    ref = reference_gated_mlp(x, w_gate, b_gate, w_up, b_up, w_down, b_down)
    assert out.shape == (B, T, H)
    assert jnp.allclose(out, ref, atol=1e-2, rtol=1e-2), "test1 mismatch vs reference"

    # --- Test 2: lane-aligned bf16 weights, M=1024 rows.  (a) auto path
    #             (weights-resident), (b) forced tiled path exercising the
    #             (M, I) grid and the f32 accumulator. ---
    B2, T2, H2 = 2, 512, 256
    I2 = 2 * H2
    k2 = jax.random.split(jax.random.PRNGKey(1), 7)
    x2 = jax.random.normal(k2[0], (B2, T2, H2), dtype=jnp.float32)
    sh2 = 1.0 / (H2 ** 0.5)
    si2 = 1.0 / (I2 ** 0.5)
    wg2 = jax.random.uniform(k2[1], (I2, H2), jnp.float32, -sh2, sh2)
    bg2 = jax.random.uniform(k2[2], (I2,), jnp.float32, -sh2, sh2)
    wu2 = jax.random.uniform(k2[3], (I2, H2), jnp.float32, -sh2, sh2)
    bu2 = jax.random.uniform(k2[4], (I2,), jnp.float32, -sh2, sh2)
    wd2 = jax.random.uniform(k2[5], (H2, I2), jnp.float32, -si2, si2)
    bd2 = jax.random.uniform(k2[6], (H2,), jnp.float32, -si2, si2)

    p2 = prepare_params(wg2, bg2, wu2, bu2, wd2, bd2, dtype=jnp.bfloat16)

    # bf16-quantized reference (kernel feeds the MXU bf16 operands).
    q = lambda a: a.astype(jnp.bfloat16).astype(jnp.float32)
    ref2 = reference_gated_mlp(q(x2), q(wg2), q(bg2), q(wu2), q(bu2),
                               q(wd2), q(bd2))

    out2a = jax.block_until_ready(gated_mlp(x2, *p2))
    assert jnp.allclose(out2a.astype(jnp.float32), ref2, atol=5e-2, rtol=5e-2), \
        "test2a (resident) mismatch vs reference"

    out2b = jax.block_until_ready(
        gated_mlp(x2, *p2, tile_m=256, tile_i=128, force_tiled=True))
    assert jnp.allclose(out2b.astype(jnp.float32), ref2, atol=5e-2, rtol=5e-2), \
        "test2b (tiled/accumulator) mismatch vs reference"

    # TODO(synk): dropout is identity here (config.dropout == 0.0); nonzero dropout
    # would use pltpu.prng_seed + pltpu.prng_random_bits to build the mask in-kernel.
    print("KERNEL_OK")
</pallas_src>

<mosaic_0001>
module attributes {stable_mosaic.version = 11 : i64} {
  func.func @_gated_mlp_resident_kernel(%arg0: i32, %arg1: memref<16x32xf32, #tpu.memory_space<vmem>>, %arg2: memref<2x32x64xf32, #tpu.memory_space<vmem>>, %arg3: memref<2x1x64xf32, #tpu.memory_space<vmem>>, %arg4: memref<64x32xf32, #tpu.memory_space<vmem>>, %arg5: memref<1x32xf32, #tpu.memory_space<vmem>>, %arg6: memref<16x32xf32, #tpu.memory_space<vmem>>) attributes {dimension_semantics = [#tpu.dimension_semantics<parallel>], iteration_bounds = array<i64: 1>, scalar_prefetch = 0 : i64, scratch_operands = 0 : i64, tpu.core_type = #tpu.core_type<tc>, window_params = [{transform_indices = @transform_0, window_bounds = array<i64: 16, 32>}, {pipeline_mode = #tpu.pipeline_mode<synchronous>, transform_indices = @transform_1, window_bounds = array<i64: 2, 32, 64>}, {pipeline_mode = #tpu.pipeline_mode<synchronous>, transform_indices = @transform_2, window_bounds = array<i64: 2, 1, 64>}, {pipeline_mode = #tpu.pipeline_mode<synchronous>, transform_indices = @transform_3, window_bounds = array<i64: 64, 32>}, {pipeline_mode = #tpu.pipeline_mode<synchronous>, transform_indices = @transform_4, window_bounds = array<i64: 1, 32>}, {transform_indices = @transform_5, window_bounds = array<i64: 16, 32>}]} {
    %c0 = arith.constant 0 : index
    %c0_0 = arith.constant 0 : index
    %0 = vector.load %arg1[%c0, %c0_0] : memref<16x32xf32, #tpu.memory_space<vmem>>, vector<16x32xf32>
    %c0_1 = arith.constant 0 : index
    %c0_2 = arith.constant 0 : index
    %c0_3 = arith.constant 0 : index
    %1 = vector.load %arg2[%c0_1, %c0_2, %c0_3] : memref<2x32x64xf32, #tpu.memory_space<vmem>>, vector<1x32x64xf32>
    %2 = vector.shape_cast %1 : vector<1x32x64xf32> to vector<32x64xf32>
    %cst = arith.constant dense<0.000000e+00> : vector<16x64xf32>
    %3 = tpu.matmul %0, %2, %cst {dimension_numbers = #tpu.dot_dimension_numbers<[1], [0], [0], [1], [0, 0, 1, 1], [], []>} : vector<16x32xf32>, vector<32x64xf32>, vector<16x64xf32> -> vector<16x64xf32>
    %c0_4 = arith.constant 0 : index
    %c0_5 = arith.constant 0 : index
    %c0_6 = arith.constant 0 : index
    %4 = vector.load %arg3[%c0_4, %c0_5, %c0_6] : memref<2x1x64xf32, #tpu.memory_space<vmem>>, vector<1x1x64xf32>
    %5 = vector.shape_cast %4 : vector<1x1x64xf32> to vector<1x64xf32>
    %6 = vector.broadcast %5 : vector<1x64xf32> to vector<16x64xf32>
    %7 = arith.addf %3, %6 : vector<16x64xf32>
    %c1 = arith.constant 1 : index
    %c0_7 = arith.constant 0 : index
    %c0_8 = arith.constant 0 : index
    %8 = vector.load %arg2[%c1, %c0_7, %c0_8] : memref<2x32x64xf32, #tpu.memory_space<vmem>>, vector<1x32x64xf32>
    %9 = vector.shape_cast %8 : vector<1x32x64xf32> to vector<32x64xf32>
    %cst_9 = arith.constant dense<0.000000e+00> : vector<16x64xf32>
    %10 = tpu.matmul %0, %9, %cst_9 {dimension_numbers = #tpu.dot_dimension_numbers<[1], [0], [0], [1], [0, 0, 1, 1], [], []>} : vector<16x32xf32>, vector<32x64xf32>, vector<16x64xf32> -> vector<16x64xf32>
    %c1_10 = arith.constant 1 : index
    %c0_11 = arith.constant 0 : index
    %c0_12 = arith.constant 0 : index
    %11 = vector.load %arg3[%c1_10, %c0_11, %c0_12] : memref<2x1x64xf32, #tpu.memory_space<vmem>>, vector<1x1x64xf32>
    %12 = vector.shape_cast %11 : vector<1x1x64xf32> to vector<1x64xf32>
    %13 = vector.broadcast %12 : vector<1x64xf32> to vector<16x64xf32>
    %14 = arith.addf %10, %13 : vector<16x64xf32>
    %15 = arith.negf %7 : vector<16x64xf32>
    %16 = math.exp %15 : vector<16x64xf32>
    %cst_13 = arith.constant 1.000000e+00 : f32
    %17 = vector.broadcast %cst_13 : f32 to vector<16x64xf32>
    %18 = arith.addf %17, %16 : vector<16x64xf32>
    %19 = arith.divf %17, %18 : vector<16x64xf32>
    %20 = arith.mulf %7, %19 : vector<16x64xf32>
    %21 = arith.mulf %20, %14 : vector<16x64xf32>
    %c0_14 = arith.constant 0 : index
    %c0_15 = arith.constant 0 : index
    %22 = vector.load %arg4[%c0_14, %c0_15] : memref<64x32xf32, #tpu.memory_space<vmem>>, vector<64x32xf32>
    %cst_16 = arith.constant dense<0.000000e+00> : vector<16x32xf32>
    %23 = tpu.matmul %21, %22, %cst_16 {dimension_numbers = #tpu.dot_dimension_numbers<[1], [0], [0], [1], [0, 0, 1, 1], [], []>} : vector<16x64xf32>, vector<64x32xf32>, vector<16x32xf32> -> vector<16x32xf32>
    %c0_17 = arith.constant 0 : index
    %c0_18 = arith.constant 0 : index
    %24 = vector.load %arg5[%c0_17, %c0_18] : memref<1x32xf32, #tpu.memory_space<vmem>>, vector<1x32xf32>
    %25 = vector.broadcast %24 : vector<1x32xf32> to vector<16x32xf32>
    %26 = arith.addf %23, %25 : vector<16x32xf32>
    %c0_19 = arith.constant 0 : index
    %c0_20 = arith.constant 0 : index
    %27 = vector.load %arg6[%c0_19, %c0_20] : memref<16x32xf32, #tpu.memory_space<vmem>>, vector<16x32xf32>
    tpu.vector_store %arg6[%c0_19, %c0_20], %26 {strides = array<i32>} : memref<16x32xf32, #tpu.memory_space<vmem>>, vector<16x32xf32>,
    return
  }
  func.func @transform_0(%arg0: i32) -> (i32, i32) {
    %c0_i32 = arith.constant 0 : i32
    %c0_i32_0 = arith.constant 0 : i32
    return %arg0, %c0_i32 : i32, i32
  }
  func.func @transform_1(%arg0: i32) -> (i32, i32, i32) {
    %c0_i32 = arith.constant 0 : i32
    %c0_i32_0 = arith.constant 0 : i32
    %c0_i32_1 = arith.constant 0 : i32
    %c0_i32_2 = arith.constant 0 : i32
    return %c0_i32, %c0_i32_0, %c0_i32_1 : i32, i32, i32
  }
  func.func @transform_2(%arg0: i32) -> (i32, i32, i32) {
    %c0_i32 = arith.constant 0 : i32
    %c0_i32_0 = arith.constant 0 : i32
    %c0_i32_1 = arith.constant 0 : i32
    %c0_i32_2 = arith.constant 0 : i32
    return %c0_i32, %c0_i32_0, %c0_i32_1 : i32, i32, i32
  }
  func.func @transform_3(%arg0: i32) -> (i32, i32) {
    %c0_i32 = arith.constant 0 : i32
    %c0_i32_0 = arith.constant 0 : i32
    %c0_i32_1 = arith.constant 0 : i32
    return %c0_i32, %c0_i32_0 : i32, i32
  }
  func.func @transform_4(%arg0: i32) -> (i32, i32) {
    %c0_i32 = arith.constant 0 : i32
    %c0_i32_0 = arith.constant 0 : i32
    %c0_i32_1 = arith.constant 0 : i32
    return %c0_i32, %c0_i32_0 : i32, i32
  }
  func.func @transform_5(%arg0: i32) -> (i32, i32) {
    %c0_i32 = arith.constant 0 : i32
    %c0_i32_0 = arith.constant 0 : i32
    return %arg0, %c0_i32 : i32, i32
  }
}

</mosaic_0001>

<bundles_post_ra>
// kernel: gated_mlp.1
= control target key start
LH: loop header
LB: loop body
LE: loop exit
PB: predicated region body
PF: predicated region fallthrough
CT: control target
= control target key end

     0   :  { %vm34_vm0 = vcmask 261120   ;;  %s595_s0 = inlined_call_operand.vmem [shape: f32[16,32], index: 0, kind: input, shape index: {}]   ;;  %s596_s1 = inlined_call_operand.vmem [shape: f32[2,32,64], index: 1, kind: input, shape index: {}]   ;;  %s597_s2 = inlined_call_operand.vmem [shape: f32[2,1,64], index: 2, kind: input, shape index: {}]   ;;  %s598_s3 = inlined_call_operand.vmem [shape: f32[64,32], index: 3, kind: input, shape index: {}]   ;;  %s599_s4 = inlined_call_operand.vmem [shape: f32[1,32], index: 4, kind: input, shape index: {}]   ;;  %s600_s5 = inlined_call_operand.hbm [shape: f32[16,32], index: 5, kind: output, shape index: {}]  }
   0x1   :  { %v23_v0 = vld [vmem:[%s596_s1] sm:$0xff]  ;;  %v24_v1 = vld [vmem:[%s596_s1 + $0x8] sm:$0xff]  ;;  %v25_v2 = vld [vmem:[%s596_s1 + $0x10] sm:$0xff] }
   0x2   :  { %v414_v3 = vpack.c.bf16 %v24_v1, %v23_v0  ;;  %v26_v4 = vld [vmem:[%s596_s1 + $0x18] sm:$0xff]  ;;  %v21_v5 = vld [vmem:[%s595_s0] sm:$0xff]  ;;  %v339_v8 = vld [vmem:[%s596_s1 + $0x28] sm:$0xff] }
   0x3   :  { %v418_v6 = vpack.c.bf16 %v26_v4, %v25_v2  ;;  %381 = vmatprep.mubr.msk.f32.mxu1 %vm34_vm0, %v21_v5  ;;  %v338_v7 = vld [vmem:[%s596_s1 + $0x20] sm:$0xff] }
   0x4   :  { %415 = vmatprep.subr.bf16.mxu1 %v414_v3 }
   0x5   :  { %10 = vsyncpa [#allocation3], 0  ;;  %417 = vmatpush3.bf16.msra.mxu1 %v414_v3  ;;  %v422_v9 = vpack.c.bf16 %v339_v8, %v338_v7  ;;  %v340_v10 = vld [vmem:[%s596_s1 + $0x30] sm:$0xff]  ;;  %v341_v11 = vld [vmem:[%s596_s1 + $0x38] sm:$0xff]  ;;  %vm235_vm1 = vcmask 523264   ;;  %s481_s7 = smov [#allocation2]  }
   0x6   :  { %419 = vmatprep.subr.bf16.mxu1 %v418_v6  ;;  %v22_v12 = vld [vmem:[%s595_s0 + $0x8] sm:$0xff]  ;;  %v426_v13 = vpack.c.bf16 %v341_v11, %v340_v10  ;;  %v220_v14 = vld [vmem:[%s598_s3] sm:$0xff]  ;;  %v222_v17 = vld [vmem:[%s598_s3 + $0x10] sm:$0xff]  ;;  %s324_s8 = sshll.u32 %s481_s7, 4  ;;  %s325_s8 = int_to_ptr.vmem [resolvable:$true] %s324_s8 }
   0x7   :  { %v221_v15 = vld [vmem:[%s598_s3 + $0x8] sm:$0xff]  ;;  %v223_v18 = vld [vmem:[%s598_s3 + $0x18] sm:$0xff]  ;;  %v224_v20 = vld [vmem:[%s598_s3 + $0x20] sm:$0xff]  ;;  %p462_p1 = scmp.lt.s32.totalorder %s325_s8, %s325_s8 }
   0x8   :  { %v430_v16 = vpack.c.bf16 %v221_v15, %v220_v14  ;;  %v434_v19 = vpack.c.bf16 %v223_v18, %v222_v17  ;;  %v225_v21 = vld [vmem:[%s598_s3 + $0x28] sm:$0xff]  ;;  %v226_v23 = vld [vmem:[%s598_s3 + $0x30] sm:$0xff]  ;;  %v227_v24 = vld [vmem:[%s598_s3 + $0x38] sm:$0xff] }
   0x9   :  { %421 = vmatpush3.bf16.msra.mxu1 %v418_v6  ;;  %v438_v22 = vpack.c.bf16 %v225_v21, %v224_v20  ;;  %v442_v25 = vpack.c.bf16 %v227_v24, %v226_v23  ;;  %v335_v26 = vld [vmem:[%s597_s2] ss:$0 sm:$0xff]  ;;  %v343_v39 = vld [vmem:[%s597_s2 + $0x1] ss:$0 sm:$0xff]  ;;  %s457_s2 = scalar_lea.vmem %s325_s8, 256 }
   0xa   :  { %423 = vmatprep.subr.bf16.mxu1 %v422_v9  ;;  %431 = vmatprep.subr.bf16.mxu0 %v430_v16  ;;  %v348_v48 = vld [vmem:[%s599_s4] ss:$0 sm:$0xff]  ;;  %p458_p0 = scmp.ne.s32.totalorder %s325_s8, %s457_s2  ;;  %p463_p2 = scmp.lt.s32.totalorder %s457_s2, %s457_s2 }
   0xb   :  { %433 = vmatpush3.bf16.msra.mxu0 %v430_v16 }
   0xc   :  { %382 = vmatmul.mubr.msk.f32.vlgmr.msra.gmra.mrb[0].mxu1 %vm34_vm0, %v22_v12  ;;  %435 = vmatprep.subr.bf16.mxu0 %v434_v19  ;;  %p464_p3 = por %p463_p2, %p462_p1 }
   0xd   :  { %425 = vmatpush3.bf16.msra.mxu1 %v422_v9  ;;  %392 = vmatprep.mubr.msk.f32.mxu1 %vm34_vm0, %v21_v5 }
   0xe   :  { %427 = vmatprep.subr.bf16.mxu1 %v426_v13  ;;  %p465_p4 = pnand %p464_p3, %p458_p0 }
   0xf   :  { %437 = vmatpush3.bf16.msra.mxu0 %v434_v19 }
  0x10   :  { %439 = vmatprep.subr.bf16.mxu0 %v438_v22 }
  0x11   :  { %429 = vmatpush3.bf16.msra.mxu1 %v426_v13 }
  0x13   :  { %441 = vmatpush3.bf16.msra.mxu0 %v438_v22 }
  0x14   :  { %393 = vmatmul.mubr.msk.f32.vlgmr.msra.gmra.mrb[2].mxu1 %vm34_vm0, %v22_v12  ;;  %443 = vmatprep.subr.bf16.mxu0 %v442_v25 }
  0x17   :  { %445 = vmatpush3.bf16.msra.mxu0 %v442_v25 }
  0xdf   :  { %v383_v27 = vpop.f32.mrb[0].mxu1 }
  0xe0   :  { %v113_v28 = vadd.f32 %v383_v27, %v335_v26  ;;  %v107_v29 = vpop.f32.mrb[1].mxu1 }
  0xe1   :  { %v108_v30 = vadd.f32 %v335_v26, %v107_v29 }
  0xe2   :  { %v347_v31 = vmul.f32 -1.442695, %v113_v28 }
  0xe3   :  { %v346_v32 = vmul.f32 -1.442695, %v108_v30 }
  0xe4   :  { %449 = vpow2.f32 %v347_v31 }
  0xe5   :  { %451 = vpow2.f32 %v346_v32 }
  0xe7   :  { %v394_v33 = vpop.f32.mrb[2].mxu1 }
  0xe8   :  { %v195_v34 = vpop.f32.mrb[3].mxu1  ;;  %v201_v40 = vadd.f32 %v394_v33, %v343_v39 }
  0xe9   :  { %v196_v42 = vadd.f32 %v343_v39, %v195_v34 }
  0xee   :  { %v450_v35 = vpop.eup %449 }
  0xef   :  { %v452_v36 = vpop.eup %451  ;;  %v211_v37 = vadd.f32 1.0, %v450_v35 }
  0xf0   :  { %v210_v38 = vadd.f32 1.0, %v452_v36 }
  0xf1   :  { %453 = vrcp.f32 %v211_v37 }
  0xf2   :  { %455 = vrcp.f32 %v210_v38 }
  0xfb   :  { %v454_v41 = vpop.eup %453 }
  0xfc   :  { %v456_v43 = vpop.eup %455  ;;  %v217_v44 = vmul.f32 %v454_v41, %v113_v28 }
  0xfd   :  { %v216_v45 = vmul.f32 %v456_v43, %v108_v30 }
  0xfe   :  { %v219_v46 = vmul.f32 %v217_v44, %v201_v40 }
  0xff   :  { %v218_v47 = vmul.f32 %v216_v45, %v196_v42 }
 0x101   :  { %411 = vmatprep.mubr.msk.f32.mxu0 %vm235_vm1, %v218_v47 }
 0x102   :  { %412 = vmatmul.mubr.msk.f32.vlgmr.msra.gmra.mrb[0].mxu0 %vm235_vm1, %v219_v46 }
 0x1d5   :  { %v413_v49 = vpop.f32.mrb[0].mxu0 }
 0x1d6   :  { %v314_v50 = vadd.f32 %v413_v49, %v348_v48  ;;  %v308_v51 = vpop.f32.mrb[1].mxu0 }
 0x1d7   :  { %v309_v52 = vadd.f32 %v348_v48, %v308_v51 }
 0x1d8   :  { %318 = vst.msk [vmem:[#allocation2 + $0x8] sm:$0xff] %vm34_vm0, %v314_v50 }
 0x1d9   :  { %317 = vst.msk [vmem:[#allocation2] sm:$0xff] %vm34_vm0, %v309_v52 }
 0x1da   :  { %468 = shalt.err (!%p465_p4)
}
 0x1db   :  { %s469_s10 = scalar_lea.hbm %s600_s5, 256 }
 0x1dc   :  { %p470_p5 = scmp.ne.s32.totalorder %s600_s5, %s469_s10  ;;  %p473_p6 = scmp.lt.u32.totalorder %s469_s10, %s600_s5 }
 0x1de   :  { %p475_p7 = pnand %p473_p6, %p470_p5 }
 0x1e0   :  { %478 = shalt.err (!%p475_p7)
}
 0x1e1   :  { %s482_s1 = smov 128   ;;  %s483_s15 = smov 8  }
 0x1e2   :  { %330 = dma.vmem_to_hbm [thread:$0]  %s325_s8, 256, %s600_s5, [#allocation3], %s482_s1, %s482_s1, %s483_s15  }
 0x1e3   :  { %479 = dma.done.wait [#allocation3], 256  }
 0x1e4   :  { %480 = vsyncadd [#allocation3], 4294967040 }
 0x1e5   :  { %334 = vsyncpa [#allocation3], 1 }

</bundles_post_ra>
